<compile_context>
chip_gen: v5e
topology: v5e:2x2
jax: 0.10.0
libtpu: 0.0.40
codegen_flags: <defaults>
</compile_context>

<pallas_src>
import jax
import jax.numpy as jnp
from jax.experimental import pallas as pl
from jax.experimental.pallas import tpu as pltpu


def _touch_kernel(*refs):
    """refs = (in_0..in_{n-1}, out_0..out_{n-1}); pure pass-through of each tensor."""
    n = len(refs) // 2
    for i in range(n):
        refs[n + i][...] = refs[i][...]


@jax.jit
def fused_pallas_touch(*tensors):
    """Route all tensors through ONE Pallas identity kernel (aliased, in-place, 1 launch)."""
    n = len(tensors)
    return pl.pallas_call(
        _touch_kernel,
        out_shape=tuple(jax.ShapeDtypeStruct(t.shape, t.dtype) for t in tensors),
        # Full-array blocks in VMEM: no grid, no packing, no per-step overhead.
        in_specs=[pl.BlockSpec(memory_space=pltpu.MemorySpace.VMEM) for _ in tensors],
        out_specs=tuple(pl.BlockSpec(memory_space=pltpu.MemorySpace.VMEM)
                        for _ in tensors),
        # Alias every input to its output: no temporaries, writeback is in place.
        input_output_aliases={i: i for i in range(n)},
        # Guarantee the launch is not DCE'd under an outer jit when the result is dropped.
        compiler_params=pltpu.CompilerParams(has_side_effects=True),
    )(*tensors)


class TrainAbstractMetrics:
    """JAX/Pallas port of digress.metrics.abstract_metrics.TrainAbstractMetrics."""

    def __init__(self, debug_tpu_touch: bool = False):
        # Reference module defines no parameters / buffers.
        self.debug_tpu_touch = debug_tpu_touch

    def forward(self, masked_pred_epsX, masked_pred_epsE, pred_y,
                true_epsX, true_epsE, true_y, log):
        # Reference forward() body is `pass` -> return None; do ZERO work on the hot path.
        if self.debug_tpu_touch:
            # Optional single fused Pallas launch (kept alive by has_side_effects=True);
            # result intentionally discarded, no host sync.
            fused_pallas_touch(masked_pred_epsX, masked_pred_epsE, pred_y,
                               true_epsX, true_epsE, true_y)
        return None

    def __call__(self, *args, **kwargs):
        return self.forward(*args, **kwargs)

    def reset(self):
        pass

    def log_epoch_metrics(self):
        return (None, None)


if __name__ == "__main__":
    key = jax.random.PRNGKey(0)
    k1, k2, k3, k4, k5, k6 = jax.random.split(key, 6)

    bs, n, dx, de, dy = 2, 8, 16, 8, 16
    masked_pred_epsX = jax.random.normal(k1, (bs, n, dx), dtype=jnp.float32)
    masked_pred_epsE = jax.random.normal(k2, (bs, n, n, de), dtype=jnp.float32)
    pred_y = jax.random.normal(k3, (bs, dy), dtype=jnp.float32)
    true_epsX = jax.random.normal(k4, (bs, n, dx), dtype=jnp.float32)
    true_epsE = jax.random.normal(k5, (bs, n, n, de), dtype=jnp.float32)
    true_y = jax.random.normal(k6, (bs, dy), dtype=jnp.float32)

    # Hot path: identical semantics to the PyTorch module (returns None, no work).
    metrics = TrainAbstractMetrics()
    out = metrics(masked_pred_epsX, masked_pred_epsE, pred_y,
                  true_epsX, true_epsE, true_y, log=True)
    assert out is None  # matches the PyTorch forward's return value

    # Run the fused, aliased Pallas kernel once and verify bit-exact pass-through.
    tensors = (masked_pred_epsX, masked_pred_epsE, pred_y, true_epsX, true_epsE, true_y)
    outs = jax.block_until_ready(fused_pallas_touch(*tensors))
    for orig, rt in zip(tensors, outs):
        assert rt.shape == orig.shape and rt.dtype == orig.dtype
        assert bool(jnp.all(rt == orig))

    # Debug-touch branch also executes cleanly (result discarded by design).
    TrainAbstractMetrics(debug_tpu_touch=True)(
        masked_pred_epsX, masked_pred_epsE, pred_y,
        true_epsX, true_epsE, true_y, log=True)

    print("KERNEL_OK")
</pallas_src>

<mosaic_0001>
module attributes {stable_mosaic.version = 11 : i64} {
  func.func @_touch_kernel(%arg0: memref<2x8x16xf32, #tpu.memory_space<vmem>>, %arg1: memref<2x8x8x8xf32, #tpu.memory_space<vmem>>, %arg2: memref<2x16xf32, #tpu.memory_space<vmem>>, %arg3: memref<2x8x16xf32, #tpu.memory_space<vmem>>, %arg4: memref<2x8x8x8xf32, #tpu.memory_space<vmem>>, %arg5: memref<2x16xf32, #tpu.memory_space<vmem>>, %arg6: memref<2x8x16xf32, #tpu.memory_space<vmem>>, %arg7: memref<2x8x8x8xf32, #tpu.memory_space<vmem>>, %arg8: memref<2x16xf32, #tpu.memory_space<vmem>>, %arg9: memref<2x8x16xf32, #tpu.memory_space<vmem>>, %arg10: memref<2x8x8x8xf32, #tpu.memory_space<vmem>>, %arg11: memref<2x16xf32, #tpu.memory_space<vmem>>) attributes {dimension_semantics = [], scalar_prefetch = 0 : i64, scratch_operands = 0 : i64, tpu.core_type = #tpu.core_type<tc>} {
    %c0 = arith.constant 0 : index
    %c0_0 = arith.constant 0 : index
    %c0_1 = arith.constant 0 : index
    %0 = vector.load %arg0[%c0, %c0_0, %c0_1] : memref<2x8x16xf32, #tpu.memory_space<vmem>>, vector<2x8x16xf32>
    %c0_2 = arith.constant 0 : index
    %c0_3 = arith.constant 0 : index
    %c0_4 = arith.constant 0 : index
    %1 = vector.load %arg6[%c0_2, %c0_3, %c0_4] : memref<2x8x16xf32, #tpu.memory_space<vmem>>, vector<2x8x16xf32>
    tpu.vector_store %arg6[%c0_2, %c0_3, %c0_4], %0 {strides = array<i32>} : memref<2x8x16xf32, #tpu.memory_space<vmem>>, vector<2x8x16xf32>,
    %c0_5 = arith.constant 0 : index
    %c0_6 = arith.constant 0 : index
    %c0_7 = arith.constant 0 : index
    %c0_8 = arith.constant 0 : index
    %2 = vector.load %arg1[%c0_5, %c0_6, %c0_7, %c0_8] : memref<2x8x8x8xf32, #tpu.memory_space<vmem>>, vector<2x8x8x8xf32>
    %c0_9 = arith.constant 0 : index
    %c0_10 = arith.constant 0 : index
    %c0_11 = arith.constant 0 : index
    %c0_12 = arith.constant 0 : index
    %3 = vector.load %arg7[%c0_9, %c0_10, %c0_11, %c0_12] : memref<2x8x8x8xf32, #tpu.memory_space<vmem>>, vector<2x8x8x8xf32>
    tpu.vector_store %arg7[%c0_9, %c0_10, %c0_11, %c0_12], %2 {strides = array<i32>} : memref<2x8x8x8xf32, #tpu.memory_space<vmem>>, vector<2x8x8x8xf32>,
    %c0_13 = arith.constant 0 : index
    %c0_14 = arith.constant 0 : index
    %4 = vector.load %arg2[%c0_13, %c0_14] : memref<2x16xf32, #tpu.memory_space<vmem>>, vector<2x16xf32>
    %c0_15 = arith.constant 0 : index
    %c0_16 = arith.constant 0 : index
    %5 = vector.load %arg8[%c0_15, %c0_16] : memref<2x16xf32, #tpu.memory_space<vmem>>, vector<2x16xf32>
    tpu.vector_store %arg8[%c0_15, %c0_16], %4 {strides = array<i32>} : memref<2x16xf32, #tpu.memory_space<vmem>>, vector<2x16xf32>,
    %c0_17 = arith.constant 0 : index
    %c0_18 = arith.constant 0 : index
    %c0_19 = arith.constant 0 : index
    %6 = vector.load %arg3[%c0_17, %c0_18, %c0_19] : memref<2x8x16xf32, #tpu.memory_space<vmem>>, vector<2x8x16xf32>
    %c0_20 = arith.constant 0 : index
    %c0_21 = arith.constant 0 : index
    %c0_22 = arith.constant 0 : index
    %7 = vector.load %arg9[%c0_20, %c0_21, %c0_22] : memref<2x8x16xf32, #tpu.memory_space<vmem>>, vector<2x8x16xf32>
    tpu.vector_store %arg9[%c0_20, %c0_21, %c0_22], %6 {strides = array<i32>} : memref<2x8x16xf32, #tpu.memory_space<vmem>>, vector<2x8x16xf32>,
    %c0_23 = arith.constant 0 : index
    %c0_24 = arith.constant 0 : index
    %c0_25 = arith.constant 0 : index
    %c0_26 = arith.constant 0 : index
    %8 = vector.load %arg4[%c0_23, %c0_24, %c0_25, %c0_26] : memref<2x8x8x8xf32, #tpu.memory_space<vmem>>, vector<2x8x8x8xf32>
    %c0_27 = arith.constant 0 : index
    %c0_28 = arith.constant 0 : index
    %c0_29 = arith.constant 0 : index
    %c0_30 = arith.constant 0 : index
    %9 = vector.load %arg10[%c0_27, %c0_28, %c0_29, %c0_30] : memref<2x8x8x8xf32, #tpu.memory_space<vmem>>, vector<2x8x8x8xf32>
    tpu.vector_store %arg10[%c0_27, %c0_28, %c0_29, %c0_30], %8 {strides = array<i32>} : memref<2x8x8x8xf32, #tpu.memory_space<vmem>>, vector<2x8x8x8xf32>,
    %c0_31 = arith.constant 0 : index
    %c0_32 = arith.constant 0 : index
    %10 = vector.load %arg5[%c0_31, %c0_32] : memref<2x16xf32, #tpu.memory_space<vmem>>, vector<2x16xf32>
    %c0_33 = arith.constant 0 : index
    %c0_34 = arith.constant 0 : index
    %11 = vector.load %arg11[%c0_33, %c0_34] : memref<2x16xf32, #tpu.memory_space<vmem>>, vector<2x16xf32>
    tpu.vector_store %arg11[%c0_33, %c0_34], %10 {strides = array<i32>} : memref<2x16xf32, #tpu.memory_space<vmem>>, vector<2x16xf32>,
    return
  }
}

</mosaic_0001>

<bundles_post_ra>
// kernel: fused_pallas_touch.1
= control target key start
LH: loop header
LB: loop body
LE: loop exit
PB: predicated region body
PF: predicated region fallthrough
CT: control target
= control target key end

     0   :  { %17 = vsyncpa [#allocation3], 0  ;;  %s809_s0 = inlined_call_operand.hbm [shape: f32[2,8,16], index: 0, kind: input, shape index: {}, may-alias: {0,6}]   ;;  %s810_s1 = inlined_call_operand.hbm [shape: f32[2,8,8,8], index: 1, kind: input, shape index: {}, may-alias: {1,7}]   ;;  %s811_s2 = inlined_call_operand.hbm [shape: f32[2,16], index: 2, kind: input, shape index: {}, may-alias: {2,8}]   ;;  %s812_s3 = inlined_call_operand.hbm [shape: f32[2,8,16], index: 3, kind: input, shape index: {}, may-alias: {3,9}]   ;;  %s813_s4 = inlined_call_operand.hbm [shape: f32[2,8,8,8], index: 4, kind: input, shape index: {}, may-alias: {4,10}]   ;;  %s814_s5 = inlined_call_operand.hbm [shape: f32[2,16], index: 5, kind: input, shape index: {}, may-alias: {5,11}]   ;;  %s815_s6 = inlined_call_operand.hbm [shape: f32[2,8,16], index: 6, kind: output, shape index: {0}, may-alias: {0,6}]   ;;  %s816_s7 = inlined_call_operand.hbm [shape: f32[2,8,8,8], index: 7, kind: output, shape index: {1}, may-alias: {1,7}]   ;;  %s817_s8 = inlined_call_operand.hbm [shape: f32[2,16], index: 8, kind: output, shape index: {2}, may-alias: {2,8}]   ;;  %s818_s9 = inlined_call_operand.hbm [shape: f32[2,8,16], index: 9, kind: output, shape index: {3}, may-alias: {3,9}]   ;;  %s819_s10 = inlined_call_operand.hbm [shape: f32[2,8,8,8], index: 10, kind: output, shape index: {4}, may-alias: {4,10}]   ;;  %s820_s11 = inlined_call_operand.hbm [shape: f32[2,16], index: 11, kind: output, shape index: {5}, may-alias: {5,11}]  }
   0x1   :  { %18 = vsyncpa [#allocation6], 0 }
   0x2   :  { %19 = vsyncpa [#allocation9], 0 }
   0x3   :  { %20 = vsyncpa [#allocation12], 0 }
   0x4   :  { %21 = vsyncpa [#allocation4], 0 }
   0x5   :  { %22 = vsyncpa [#allocation15], 0 }
   0x6   :  { %23 = vsyncpa [#allocation18], 0 }
   0x7   :  { %24 = vsyncpa [#allocation21], 0  ;;  %s42_s19 = sshll.u32 %s810_s1, 4  ;;  %s626_s20 = smov [#allocation5]   ;;  %s43_s19 = int_to_ptr.hbm [resolvable:$true] %s42_s19 }
   0x8   :  { %s44_s21 = sshll.u32 %s626_s20, 4  ;;  %s66_s24 = sshll.u32 %s812_s3, 4  ;;  %s45_s21 = int_to_ptr.vmem [resolvable:$true] %s44_s21  ;;  %s67_s24 = int_to_ptr.hbm [resolvable:$true] %s66_s24 }
   0x9   :  { %s627_s25 = smov 128   ;;  %s628_s26 = smov 8  }
   0xa   :  { %50 = dma.hbm_to_vmem [thread:$0]  %s43_s19, 2048, %s45_s21, [#allocation6], %s627_s25, %s627_s25, %s628_s26  }
   0xb   :  { %s629_s27 = smov [#allocation8]   ;;  %s29_s1 = sshll.u32 %s809_s0, 4  ;;  %s30_s1 = int_to_ptr.hbm [resolvable:$true] %s29_s1 }
   0xc   :  { %s68_s28 = sshll.u32 %s629_s27, 4  ;;  %s56_s13 = sshll.u32 %s811_s2, 4  ;;  %s69_s28 = int_to_ptr.vmem [resolvable:$true] %s68_s28  ;;  %s57_s13 = int_to_ptr.hbm [resolvable:$true] %s56_s13 }
   0xd   :  { %74 = dma.hbm_to_vmem [thread:$0]  %s67_s24, 256, %s69_s28, [#allocation9], %s627_s25, %s627_s25, %s628_s26  }
   0xe   :  { %s630_s14 = smov [#allocation2]   ;;  %s631_s16 = smov [#allocation7]  }
   0xf   :  { %s31_s15 = sshll.u32 %s630_s14, 4  ;;  %s58_s0 = sshll.u32 %s631_s16, 4  ;;  %s32_s15 = int_to_ptr.vmem [resolvable:$true] %s31_s15  ;;  %s59_s0 = int_to_ptr.vmem [resolvable:$true] %s58_s0 }
  0x10   :  { %37 = dma.hbm_to_vmem [thread:$0]  %s30_s1, 256, %s32_s15, [#allocation3], %s627_s25, %s627_s25, %s628_s26  }
  0x11   :  { %s79_s19 = sshll.u32 %s813_s4, 4  ;;  %s93_s2 = sshll.u32 %s814_s5, 4  ;;  %s80_s19 = int_to_ptr.hbm [resolvable:$true] %s79_s19  ;;  %s94_s2 = int_to_ptr.hbm [resolvable:$true] %s93_s2 }
  0x12   :  { %61 = dma.hbm_to_vmem [thread:$0]  %s57_s13, 32, %s59_s0, [#allocation6]  }
  0x13   :  { %s632_s22 = smov [#allocation10]   ;;  %s633_s24 = smov [#allocation11]  }
  0x14   :  { %s81_s23 = sshll.u32 %s632_s22, 4  ;;  %s95_s27 = sshll.u32 %s633_s24, 4  ;;  %s82_s23 = int_to_ptr.vmem [resolvable:$true] %s81_s23  ;;  %s96_s27 = int_to_ptr.vmem [resolvable:$true] %s95_s27 }
  0x15   :  { %87 = dma.hbm_to_vmem [thread:$0]  %s80_s19, 2048, %s82_s23, [#allocation9], %s627_s25, %s627_s25, %s628_s26  }
  0x16   :  { %98 = dma.hbm_to_vmem [thread:$0]  %s94_s2, 32, %s96_s27, [#allocation12]  }
  0x17   :  { %610 = dma.done.wait [#allocation3], 256  }
  0x18   :  { %611 = vsyncadd [#allocation3], 4294967040 }
  0x19   :  { %612 = dma.done.wait [#allocation6], 2080  }
  0x1a   :  { %613 = vsyncadd [#allocation6], 4294965216 }
  0x1b   :  { %614 = dma.done.wait [#allocation9], 2304  }
  0x1c   :  { %615 = vsyncadd [#allocation9], 4294964992 }
  0x1d   :  { %616 = dma.done.wait [#allocation12], 32  }
  0x1e   :  { %617 = vsyncadd [#allocation12], 4294967264  ;;  %vm144_vm0 = vcmask 64512   ;;  %v128_v0 = vld [vmem:[#allocation5] sm:$0xff]  ;;  %v129_v1 = vld [vmem:[#allocation5 + $0x8] sm:$0xff]  ;;  %s634_s4 = smov [#allocation14]  }
  0x1f   :  { %v130_v2 = vld [vmem:[#allocation5 + $0x10] sm:$0xff]  ;;  %145 = vst.msk [vmem:[#allocation14] sm:$0xff] %vm144_vm0, %v128_v0  ;;  %v131_v3 = vld [vmem:[#allocation5 + $0x18] sm:$0xff]  ;;  %v132_v4 = vld [vmem:[#allocation5 + $0x20] sm:$0xff]  ;;  %s737_s5 = sshll.u32 %s634_s4, 4  ;;  %s221_s30 = sshll.u32 %s816_s7, 4  ;;  %s220_s5 = int_to_ptr.vmem [resolvable:$true] %s737_s5  ;;  %s222_s30 = int_to_ptr.hbm [resolvable:$true] %s221_s30 }
  0x20   :  { %146 = vst.msk [vmem:[#allocation14 + $0x8] sm:$0xff] %vm144_vm0, %v129_v1  ;;  %v133_v5 = vld [vmem:[#allocation5 + $0x28] sm:$0xff]  ;;  %v134_v6 = vld [vmem:[#allocation5 + $0x30] sm:$0xff]  ;;  %v135_v7 = vld [vmem:[#allocation5 + $0x38] sm:$0xff]  ;;  %s635_s1 = smov [#allocation17]   ;;  %s245_s14 = sshll.u32 %s818_s9, 4  ;;  %s246_s14 = int_to_ptr.hbm [resolvable:$true] %s245_s14 }
  0x21   :  { %147 = vst.msk [vmem:[#allocation14 + $0x10] sm:$0xff] %vm144_vm0, %v130_v2  ;;  %v136_v8 = vld [vmem:[#allocation5 + $0x40] sm:$0xff]  ;;  %v137_v9 = vld [vmem:[#allocation5 + $0x48] sm:$0xff]  ;;  %v138_v10 = vld [vmem:[#allocation5 + $0x50] sm:$0xff]  ;;  %s747_s3 = sshll.u32 %s635_s1, 4  ;;  %s636_s7 = smov [#allocation13]   ;;  %s244_s3 = int_to_ptr.vmem [resolvable:$true] %s747_s3 }
  0x22   :  { %148 = vst.msk [vmem:[#allocation14 + $0x18] sm:$0xff] %vm144_vm0, %v131_v3  ;;  %v139_v11 = vld [vmem:[#allocation5 + $0x58] sm:$0xff]  ;;  %v140_v12 = vld [vmem:[#allocation5 + $0x60] sm:$0xff]  ;;  %v141_v13 = vld [vmem:[#allocation5 + $0x68] sm:$0xff]  ;;  %s754_s15 = sshll.u32 %s636_s7, 4  ;;  %s208_s17 = sshll.u32 %s815_s6, 4  ;;  %s207_s15 = int_to_ptr.vmem [resolvable:$true] %s754_s15  ;;  %s209_s17 = int_to_ptr.hbm [resolvable:$true] %s208_s17 }
  0x23   :  { %149 = vst.msk [vmem:[#allocation14 + $0x20] sm:$0xff] %vm144_vm0, %v132_v4  ;;  %v142_v14 = vld [vmem:[#allocation5 + $0x70] sm:$0xff]  ;;  %v143_v15 = vld [vmem:[#allocation5 + $0x78] sm:$0xff]  ;;  %vm125_vm1 = vcmask 130048   ;;  %v164_v16 = vld [vmem:[#allocation8] sm:$0xff]  ;;  %s637_s9 = smov [#allocation16]  }
  0x24   :  { %150 = vst.msk [vmem:[#allocation14 + $0x28] sm:$0xff] %vm144_vm0, %v133_v5  ;;  %v165_v17 = vld [vmem:[#allocation8 + $0x8] sm:$0xff]  ;;  %s233_s18 = sshll.u32 %s637_s9, 4  ;;  %s235_s21 = sshll.u32 %s817_s8, 4  ;;  %v124_v19 = vld [vmem:[#allocation2 + $0x8] sm:$0xff]  ;;  %vm162_vm2 = vcmask 123904   ;;  %s234_s18 = int_to_ptr.vmem [resolvable:$true] %s233_s18  ;;  %s236_s21 = int_to_ptr.hbm [resolvable:$true] %s235_s21 }
  0x25   :  { %151 = vst.msk [vmem:[#allocation14 + $0x30] sm:$0xff] %vm144_vm0, %v134_v6  ;;  %v123_v18 = vld [vmem:[#allocation2] sm:$0xff]  ;;  %v161_v20 = vld [vmem:[#allocation7] sm:$0x3]  ;;  %v170_v23 = vld [vmem:[#allocation10 + $0x10] sm:$0xff]  ;;  %s638_s6 = smov [#allocation19]  }
  0x26   :  { %152 = vst.msk [vmem:[#allocation14 + $0x38] sm:$0xff] %vm144_vm0, %v135_v7  ;;  %v168_v21 = vld [vmem:[#allocation10] sm:$0xff]  ;;  %v169_v22 = vld [vmem:[#allocation10 + $0x8] sm:$0xff]  ;;  %v171_v24 = vld [vmem:[#allocation10 + $0x18] sm:$0xff]  ;;  %s256_s8 = sshll.u32 %s638_s6, 4  ;;  %s258_s23 = sshll.u32 %s819_s10, 4  ;;  %s257_s8 = int_to_ptr.vmem [resolvable:$true] %s256_s8  ;;  %s259_s23 = int_to_ptr.hbm [resolvable:$true] %s258_s23 }
  0x27   :  { %153 = vst.msk [vmem:[#allocation14 + $0x40] sm:$0xff] %vm144_vm0, %v136_v8  ;;  %v172_v25 = vld [vmem:[#allocation10 + $0x20] sm:$0xff]  ;;  %v173_v26 = vld [vmem:[#allocation10 + $0x28] sm:$0xff]  ;;  %v174_v27 = vld [vmem:[#allocation10 + $0x30] sm:$0xff]  ;;  %s639_s24 = smov [#allocation20]   ;;  %s272_s28 = sshll.u32 %s820_s11, 4  ;;  %s273_s28 = int_to_ptr.hbm [resolvable:$true] %s272_s28 }
  0x28   :  { %154 = vst.msk [vmem:[#allocation14 + $0x48] sm:$0xff] %vm144_vm0, %v137_v9  ;;  %v175_v28 = vld [vmem:[#allocation10 + $0x38] sm:$0xff]  ;;  %v176_v29 = vld [vmem:[#allocation10 + $0x40] sm:$0xff]  ;;  %v177_v30 = vld [vmem:[#allocation10 + $0x48] sm:$0xff]  ;;  %s270_s27 = sshll.u32 %s639_s24, 4  ;;  %s271_s27 = int_to_ptr.vmem [resolvable:$true] %s270_s27 }
  0x29   :  { %155 = vst.msk [vmem:[#allocation14 + $0x50] sm:$0xff] %vm144_vm0, %v138_v10  ;;  %v178_v31 = vld [vmem:[#allocation10 + $0x50] sm:$0xff]  ;;  %v179_v32 = vld [vmem:[#allocation10 + $0x58] sm:$0xff]  ;;  %v180_v33 = vld [vmem:[#allocation10 + $0x60] sm:$0xff] }
  0x2a   :  { %156 = vst.msk [vmem:[#allocation14 + $0x58] sm:$0xff] %vm144_vm0, %v139_v11  ;;  %v181_v34 = vld [vmem:[#allocation10 + $0x68] sm:$0xff]  ;;  %v182_v35 = vld [vmem:[#allocation10 + $0x70] sm:$0xff]  ;;  %v183_v36 = vld [vmem:[#allocation10 + $0x78] sm:$0xff] }
  0x2b   :  { %157 = vst.msk [vmem:[#allocation14 + $0x60] sm:$0xff] %vm144_vm0, %v140_v12  ;;  %v200_v37 = vld [vmem:[#allocation11] sm:$0x3] }
  0x2c   :  { %158 = vst.msk [vmem:[#allocation14 + $0x68] sm:$0xff] %vm144_vm0, %v141_v13 }
  0x2d   :  { %159 = vst.msk [vmem:[#allocation14 + $0x70] sm:$0xff] %vm144_vm0, %v142_v14 }
  0x2e   :  { %160 = vst.msk [vmem:[#allocation14 + $0x78] sm:$0xff] %vm144_vm0, %v143_v15 }
  0x2f   :  { %166 = vst.msk [vmem:[#allocation17] sm:$0xff] %vm125_vm1, %v164_v16  ;;  %227 = dma.vmem_to_hbm [thread:$0]  %s220_s5, 2048, %s222_s30, [#allocation15], %s627_s25, %s627_s25, %s628_s26  }
  0x30   :  { %167 = vst.msk [vmem:[#allocation17 + $0x8] sm:$0xff] %vm125_vm1, %v165_v17 }
  0x31   :  { %126 = vst.msk [vmem:[#allocation13] sm:$0xff] %vm125_vm1, %v123_v18  ;;  %251 = dma.vmem_to_hbm [thread:$0]  %s244_s3, 256, %s246_s14, [#allocation18], %s627_s25, %s627_s25, %s628_s26  }
  0x32   :  { %127 = vst.msk [vmem:[#allocation13 + $0x8] sm:$0xff] %vm125_vm1, %v124_v19 }
  0x33   :  { %163 = vst.msk [vmem:[#allocation16] sm:$0x3] %vm162_vm2, %v161_v20  ;;  %214 = dma.vmem_to_hbm [thread:$0]  %s207_s15, 256, %s209_s17, [#allocation4], %s627_s25, %s627_s25, %s628_s26  }
  0x34   :  { %184 = vst.msk [vmem:[#allocation19] sm:$0xff] %vm144_vm0, %v168_v21  ;;  %238 = dma.vmem_to_hbm [thread:$0]  %s234_s18, 32, %s236_s21, [#allocation15]  }
  0x35   :  { %185 = vst.msk [vmem:[#allocation19 + $0x8] sm:$0xff] %vm144_vm0, %v169_v22 }
  0x36   :  { %186 = vst.msk [vmem:[#allocation19 + $0x10] sm:$0xff] %vm144_vm0, %v170_v23 }
  0x37   :  { %187 = vst.msk [vmem:[#allocation19 + $0x18] sm:$0xff] %vm144_vm0, %v171_v24 }
  0x38   :  { %188 = vst.msk [vmem:[#allocation19 + $0x20] sm:$0xff] %vm144_vm0, %v172_v25 }
  0x39   :  { %189 = vst.msk [vmem:[#allocation19 + $0x28] sm:$0xff] %vm144_vm0, %v173_v26 }
  0x3a   :  { %190 = vst.msk [vmem:[#allocation19 + $0x30] sm:$0xff] %vm144_vm0, %v174_v27 }
  0x3b   :  { %191 = vst.msk [vmem:[#allocation19 + $0x38] sm:$0xff] %vm144_vm0, %v175_v28 }
  0x3c   :  { %192 = vst.msk [vmem:[#allocation19 + $0x40] sm:$0xff] %vm144_vm0, %v176_v29 }
  0x3d   :  { %193 = vst.msk [vmem:[#allocation19 + $0x48] sm:$0xff] %vm144_vm0, %v177_v30 }
  0x3e   :  { %194 = vst.msk [vmem:[#allocation19 + $0x50] sm:$0xff] %vm144_vm0, %v178_v31 }
  0x3f   :  { %195 = vst.msk [vmem:[#allocation19 + $0x58] sm:$0xff] %vm144_vm0, %v179_v32 }
  0x40   :  { %196 = vst.msk [vmem:[#allocation19 + $0x60] sm:$0xff] %vm144_vm0, %v180_v33 }
  0x41   :  { %197 = vst.msk [vmem:[#allocation19 + $0x68] sm:$0xff] %vm144_vm0, %v181_v34 }
  0x42   :  { %198 = vst.msk [vmem:[#allocation19 + $0x70] sm:$0xff] %vm144_vm0, %v182_v35 }
  0x43   :  { %199 = vst.msk [vmem:[#allocation19 + $0x78] sm:$0xff] %vm144_vm0, %v183_v36 }
  0x44   :  { %201 = vst.msk [vmem:[#allocation20] sm:$0x3] %vm162_vm2, %v200_v37  ;;  %264 = dma.vmem_to_hbm [thread:$0]  %s257_s8, 2048, %s259_s23, [#allocation18], %s627_s25, %s627_s25, %s628_s26  }
  0x45   :  { %275 = dma.vmem_to_hbm [thread:$0]  %s271_s27, 32, %s273_s28, [#allocation21]  }
  0x46   :  { %618 = dma.done.wait [#allocation4], 256  }
  0x47   :  { %619 = vsyncadd [#allocation4], 4294967040 }
  0x48   :  { %620 = dma.done.wait [#allocation15], 2080  }
  0x49   :  { %621 = vsyncadd [#allocation15], 4294965216 }
  0x4a   :  { %622 = dma.done.wait [#allocation18], 2304  }
  0x4b   :  { %623 = vsyncadd [#allocation18], 4294964992 }
  0x4c   :  { %624 = dma.done.wait [#allocation21], 32  }
  0x4d   :  { %625 = vsyncadd [#allocation21], 4294967264 }
  0x4e   :  { %300 = vsyncpa [#allocation3], 1 }
  0x4f   :  { %301 = vsyncpa [#allocation6], 1 }
  0x50   :  { %302 = vsyncpa [#allocation9], 1 }
  0x51   :  { %303 = vsyncpa [#allocation12], 1 }
  0x52   :  { %304 = vsyncpa [#allocation4], 1 }
  0x53   :  { %305 = vsyncpa [#allocation15], 1 }
  0x54   :  { %306 = vsyncpa [#allocation18], 1 }
  0x55   :  { %307 = vsyncpa [#allocation21], 1 }

</bundles_post_ra>
